<compile_context>
chip_gen: v7x
topology: tpu7x:2x2x1
jax: 0.10.0
libtpu: 0.0.40
codegen_flags: <defaults>
</compile_context>

<pallas_src>
import numpy as np
import jax
import jax.numpy as jnp
from jax.experimental import pallas as pl
from jax.experimental.pallas import tpu as pltpu

N_BANDS = 4          # PQMF N (== conv stride)
TAPS = 62
CUTOFF = 0.15
BETA = 9.0
KLEN = TAPS + 1      # 63 filter taps
PAD = TAPS // 2      # 31
NPHASE = N_BANDS     # polyphase components (stride == N)
QLEN = 16            # taps per phase after zero-padding the filter to 64

BB = 2               # batch elements per grid block (BB * NPHASE = 8 sublanes)
SUB = BB * NPHASE    # 8 sublanes per block
CHUNK = 1024         # decimated-time chunk kept vreg-resident (multiple of 128)
N_CHUNKS_MAX = 8     # max time tile = 8192 decimated samples per grid step
HALO = 128           # cross-tile halo width (>= QLEN - 1, multiple of 128)


# ------------------------- filter construction (glue) -------------------------
def _firwin_kaiser(numtaps, cutoff, beta):
    # Equivalent to scipy.signal.firwin(numtaps, cutoff, window=('kaiser', beta))
    m = np.arange(numtaps) - (numtaps - 1) / 2.0
    h = cutoff * np.sinc(cutoff * m)
    h = h * np.kaiser(numtaps, beta)
    h = h / np.sum(h)
    return h


def make_pqmf_analysis_filters(N=N_BANDS, taps=TAPS, cutoff=CUTOFF, beta=BETA):
    qmf = _firwin_kaiser(taps + 1, cutoff, beta)
    H = np.zeros((N, taps + 1), dtype=np.float64)
    for k in range(N):
        constant_factor = (2 * k + 1) * (np.pi / (2 * N)) * (
            np.arange(taps + 1) - (taps - 1) / 2)
        phase = (-1) ** k * np.pi / 4
        H[k] = 2 * qmf * np.cos(constant_factor + phase)
    return H.astype(np.float32)  # (N, 63)


# --------------------- pltpu.roll direction probe (run once) -------------------
_ROLL_NUMPY_CONV = None


def _roll_probe_kernel(x_ref, o_ref):
    o_ref[...] = pltpu.roll(x_ref[...], 1, axis=0)


def _roll_is_numpy_convention():
    """True iff pltpu.roll(x, s, axis)[i] == x[(i - s) % n]  (np.roll convention)."""
    global _ROLL_NUMPY_CONV
    if _ROLL_NUMPY_CONV is None:
        x = jnp.zeros((SUB, 128), jnp.float32).at[0, :].set(1.0)
        y = pl.pallas_call(
            _roll_probe_kernel,
            out_shape=jax.ShapeDtypeStruct((SUB, 128), jnp.float32))(x)
        row = int(np.argmax(np.asarray(jax.block_until_ready(y))[:, 0]))
        assert row in (1, SUB - 1), f"unexpected pltpu.roll behaviour (row={row})"
        _ROLL_NUMPY_CONV = (row == 1)
    return _ROLL_NUMPY_CONV


# --------------------------------- kernel -------------------------------------
def _make_kernel(n_chunks, roll_fwd):
    t_tile = n_chunks * CHUNK
    if roll_fwd:   # roll(x, s)[i] = x[(i - s) % n]   (np.roll convention)
        s1, s2 = SUB - 1, SUB - 2            # z[i] = x[i] + x[i+1]; then + x[i+2] + x[i+3]
        place = [k for k in range(N_BANDS)]  # group sums at rows 0,4 -> rows k, 4+k
    else:          # roll(x, s)[i] = x[(i + s) % n]
        s1, s2 = 1, 2
        place = [(SUB - k) % SUB for k in range(N_BANDS)]

    def kernel(w_ref, xm_ref, xh_ref, o_ref):
        # w_ref : (SUB, 128)     column k*QLEN+q holds Hp[k, s%4, q] per sublane s
        # xm_ref: (SUB, t_tile)  phase-packed input, this time tile
        # xh_ref: (SUB, HALO)    next HALO decimated samples (cross-tile halo)
        # o_ref : (SUB, t_tile)  rows ordered 4*b_local + band
        wall = w_ref[...]
        # hoist the 64 per-(band, tap) sublane-scalar columns and their lane splats
        wb = [[jnp.broadcast_to(wall[:, k * QLEN + q:k * QLEN + q + 1], (SUB, CHUNK))
               for q in range(QLEN)] for k in range(N_BANDS)]
        row_band = jax.lax.broadcasted_iota(jnp.int32, (SUB, CHUNK), 0) % NPHASE

        def compute_chunk(xw):
            # xw: (SUB, CHUNK + HALO) input window; returns (SUB, CHUNK) rows 4*b + k
            accs = [jnp.zeros((SUB, CHUNK), jnp.float32) for _ in range(N_BANDS)]
            for q in range(QLEN):
                xs = xw[:, q:q + CHUNK]                    # static in-register shift
                for k in range(N_BANDS):
                    accs[k] = accs[k] + wb[k][q] * xs      # 4 independent chains
            # sublane reduction (roll-add tree, XLU) + interleave rows as 4*b + k
            out = None
            for k in range(N_BANDS):
                z = accs[k] + pltpu.roll(accs[k], s1, axis=0)
                z = z + pltpu.roll(z, s2, axis=0)          # per-batch sums at rows 0 and 4
                zk = pltpu.roll(z, place[k], axis=0) if place[k] else z
                out = zk if out is None else jnp.where(row_band == k, zk, out)
            return out

        if n_chunks > 1:
            @pl.loop(0, n_chunks - 1)
            def _(c):
                base = pl.multiple_of(c * CHUNK, CHUNK)
                nxt = pl.multiple_of(base + CHUNK, CHUNK)
                xw = jnp.concatenate(
                    [xm_ref[:, pl.ds(base, CHUNK)], xm_ref[:, pl.ds(nxt, HALO)]],
                    axis=1)
                o_ref[:, pl.ds(base, CHUNK)] = compute_chunk(xw)

        # peeled last chunk: needs the cross-tile halo
        base_l = t_tile - CHUNK
        xw_l = jnp.concatenate([xm_ref[:, base_l:], xh_ref[...]], axis=1)
        o_ref[:, base_l:] = compute_chunk(xw_l)

    return kernel


# -------------------------------- wrapper --------------------------------------
def make_pqmf_analysis(H):
    """Returns a jitted analysis(x): (B,1,T) -> (B,4,(T-1)//4+1) float32,
    equal to F.conv1d(x, H, padding=31, stride=4)."""
    Hnp = np.asarray(H, dtype=np.float32)
    # polyphase taps Hp[k, r, q] = H[k, 4q + r] (64th tap is zero)
    Hp = np.zeros((N_BANDS, NPHASE, QLEN), dtype=np.float32)
    for q in range(QLEN):
        for r in range(NPHASE):
            j = NPHASE * q + r
            if j < KLEN:
                Hp[:, r, q] = Hnp[:, j]
    wmat_np = np.zeros((SUB, 128), dtype=np.float32)
    for k in range(N_BANDS):
        for q in range(QLEN):
            wmat_np[:, k * QLEN + q] = np.tile(Hp[k, :, q], BB)  # sublane s -> Hp[k, s%4, q]
    wmat = jnp.asarray(wmat_np)
    roll_fwd = _roll_is_numpy_convention()

    @jax.jit
    def analysis(x):
        B, C, T = x.shape
        assert C == 1, "PQMF analysis expects a single input channel"
        T_out = (T + 2 * PAD - KLEN) // N_BANDS + 1

        B_pad = ((B + BB - 1) // BB) * BB
        n_bb = B_pad // BB
        total_chunks = pl.cdiv(T_out, CHUNK)
        n_chunks = min(N_CHUNKS_MAX, total_chunks)
        if n_bb == 1 and total_chunks > 1:
            # keep >= 2 grid steps along a parallel axis (v7x megacore)
            n_chunks = min(n_chunks, pl.cdiv(total_chunks, 2))
        t_tile = n_chunks * CHUNK
        n_t = pl.cdiv(T_out, t_tile)
        T_out_pad = n_t * t_tile
        M_total = T_out_pad + HALO           # decimated length incl. halo room
        halo_stride = t_tile // HALO         # kept in sync with the halo index_map

        # conv1d zero padding + right extension, then phase-split / sublane-pack:
        #   x_sub[4*b + r, m] = x_pad[b, 4*m + r]   (fused by XLA under jit)
        x2 = x[:, 0, :].astype(jnp.float32)
        x2 = jnp.pad(x2, ((0, B_pad - B), (PAD, NPHASE * M_total - T - PAD)))
        x_sub = (x2.reshape(B_pad, M_total, NPHASE)
                   .transpose(0, 2, 1)
                   .reshape(B_pad * NPHASE, M_total))          # (B_pad*4, M_total)

        out2d = pl.pallas_call(
            _make_kernel(n_chunks, roll_fwd),
            out_shape=jax.ShapeDtypeStruct((B_pad * N_BANDS, T_out_pad), jnp.float32),
            grid_spec=pltpu.PrefetchScalarGridSpec(
                num_scalar_prefetch=0,
                grid=(n_bb, n_t),
                in_specs=[
                    pl.BlockSpec((SUB, 128), lambda bi, ti: (0, 0)),          # taps
                    pl.BlockSpec((SUB, t_tile), lambda bi, ti: (bi, ti)),     # main tile
                    pl.BlockSpec((SUB, HALO),
                                 lambda bi, ti: (bi, (ti + 1) * halo_stride)),  # halo
                ],
                out_specs=pl.BlockSpec((SUB, t_tile), lambda bi, ti: (bi, ti)),
            ),
            compiler_params=pltpu.CompilerParams(
                dimension_semantics=("parallel", "parallel")),
        )(wmat, x_sub, x_sub)

        # rows are already ordered 4*b + k, so this reshape is free (no transpose)
        return out2d.reshape(B_pad, N_BANDS, T_out_pad)[:B, :, :T_out]

    return analysis


# ------------------------------ pure-JAX reference -----------------------------
def pqmf_analysis_ref(x, H):
    w = jnp.asarray(H, dtype=jnp.float32)[:, None, :]  # (N, 1, K)
    return jax.lax.conv_general_dilated(
        x.astype(jnp.float32), w,
        window_strides=(N_BANDS,),
        padding=[(PAD, PAD)],
        dimension_numbers=("NCH", "OIH", "NCH"),
        precision=jax.lax.Precision.HIGHEST)


if __name__ == "__main__":
    key = jax.random.PRNGKey(0)
    k1, k2 = jax.random.split(key)
    H = make_pqmf_analysis_filters()
    pqmf = make_pqmf_analysis(H)

    # small-shape check (matches the module's tiny-input regime)
    B, T = 2, 16
    x = jax.random.normal(k1, (B, 1, T), dtype=jnp.float32)
    y = jax.block_until_ready(pqmf(x))
    y_ref = jax.block_until_ready(pqmf_analysis_ref(x, H))
    np.testing.assert_allclose(np.asarray(y), np.asarray(y_ref),
                               rtol=1e-5, atol=1e-5)
    assert y.shape == (B, N_BANDS, (T - 1) // N_BANDS + 1)
    assert y.dtype == jnp.float32

    # multi-tile / in-kernel chunk loop / halo / batch-padding check
    B2, T2 = 3, 9000
    x2 = jax.random.normal(k2, (B2, 1, T2), dtype=jnp.float32)
    y2 = jax.block_until_ready(pqmf(x2))
    y2_ref = jax.block_until_ready(pqmf_analysis_ref(x2, H))
    np.testing.assert_allclose(np.asarray(y2), np.asarray(y2_ref),
                               rtol=1e-4, atol=1e-4)

    print("KERNEL_OK")
</pallas_src>

<mosaic_0001>
module attributes {stable_mosaic.version = 11 : i64} {
  func.func @_roll_probe_kernel(%arg0: memref<8x128xf32, #tpu.memory_space<vmem>>, %arg1: memref<8x128xf32, #tpu.memory_space<vmem>>) attributes {dimension_semantics = [], scalar_prefetch = 0 : i64, scratch_operands = 0 : i64, tpu.core_type = #tpu.core_type<tc>} {
    %c0 = arith.constant 0 : index
    %c0_0 = arith.constant 0 : index
    %0 = vector.load %arg0[%c0, %c0_0] : memref<8x128xf32, #tpu.memory_space<vmem>>, vector<8x128xf32>
    %c1_i32 = arith.constant 1 : i32
    %1 = tpu.dynamic_rotate %0 by %c1_i32 dim 0 : vector<8x128xf32>, i32 -> vector<8x128xf32>
    %c0_1 = arith.constant 0 : index
    %c0_2 = arith.constant 0 : index
    %2 = vector.load %arg1[%c0_1, %c0_2] : memref<8x128xf32, #tpu.memory_space<vmem>>, vector<8x128xf32>
    tpu.vector_store %arg1[%c0_1, %c0_2], %1 {strides = array<i32>} : memref<8x128xf32, #tpu.memory_space<vmem>>, vector<8x128xf32>,
    return
  }
}

</mosaic_0001>

<bundles_post_ra>
// kernel: tpu_custom_call.1
= control target key start
LH: loop header
LB: loop body
LE: loop exit
PB: predicated region body
PF: predicated region fallthrough
CT: control target
= control target key end

     0   :  { %6 = vsyncpa [#allocation3], 0  ;;  %s125_s0 = inlined_call_operand.hbm [shape: f32[8,128], index: 0, kind: input, shape index: {}]   ;;  %s126_s1 = inlined_call_operand.hbm [shape: f32[8,128], index: 1, kind: output, shape index: {}]  }
   0x1   :  { %7 = vsyncpa [#allocation4], 0  ;;  %s89_s6 = smov [#allocation2]   ;;  %s41_s10 = scalar_lea.hbm %s125_s0, 128 }
   0x2   :  { %s14_s7 = sshll.u32 %s89_s6, 4  ;;  %p42_p0 = scmp.ne.s32.totalorder %s125_s0, %s41_s10  ;;  %s15_s7 = int_to_ptr.vmem [resolvable:$true] %s14_s7 }
   0x3   :  { %p45_p1 = scmp.lt.u32.totalorder %s41_s10, %s125_s0 }
   0x5   :  { %p47_p2 = pnand %p45_p1, %p42_p0 }
   0x7   :  { %50 = shalt.err (!%p47_p2)
}
   0x8   :  { %s51_s15 = scalar_lea.vmem %s15_s7, 128  ;;  %p56_p4 = scmp.lt.s32.totalorder %s15_s7, %s15_s7 }
   0x9   :  { %p52_p3 = scmp.ne.s32.totalorder %s15_s7, %s51_s15  ;;  %p57_p5 = scmp.lt.s32.totalorder %s51_s15, %s51_s15 }
   0xb   :  { %p58_p6 = por %p57_p5, %p56_p4 }
   0xd   :  { %p59_p7 = pnand %p58_p6, %p52_p3 }
   0xf   :  { %62 = shalt.err (!%p59_p7)
}
  0x10   :  { %17 = dma.hbm_to_vmem [thread:$0]  %s125_s0, 128, %s15_s7, [#allocation3]  }
  0x11   :  { %85 = dma.done.wait [#allocation3], 128  }
  0x12   :  { %86 = vsyncadd [#allocation3], 4294967168  ;;  %s90_s18 = smov [#allocation5]   ;;  %v21_v0 = vld [vmem:[#allocation2] sm:$0xff] }
  0x13   :  { %s30_s19 = sshll.u32 %s90_s18, 4  ;;  %v22_v1 = vrot.slane %v21_v0, 7  ;;  %s31_s19 = int_to_ptr.vmem [resolvable:$true] %s30_s19 }
  0x14   :  { %s63_s20 = scalar_lea.vmem %s31_s19, 128  ;;  %p68_p9 = scmp.lt.s32.totalorder %s31_s19, %s31_s19 }
  0x15   :  { %23 = vst [vmem:[#allocation5] sm:$0xff] %v22_v1  ;;  %p64_p8 = scmp.ne.s32.totalorder %s31_s19, %s63_s20  ;;  %p69_p10 = scmp.lt.s32.totalorder %s63_s20, %s63_s20 }
  0x17   :  { %p70_p11 = por %p69_p10, %p68_p9 }
  0x19   :  { %p71_p12 = pnand %p70_p11, %p64_p8 }
  0x1b   :  { %74 = shalt.err (!%p71_p12)
}
  0x1c   :  { %s75_s23 = scalar_lea.hbm %s126_s1, 128 }
  0x1d   :  { %p76_p13 = scmp.ne.s32.totalorder %s126_s1, %s75_s23  ;;  %p79_p0 = scmp.lt.u32.totalorder %s75_s23, %s126_s1 }
  0x1f   :  { %p81_p1 = pnand %p79_p0, %p76_p13 }
  0x21   :  { %84 = shalt.err (!%p81_p1)
}
  0x22   :  { %33 = dma.vmem_to_hbm [thread:$0]  %s31_s19, 128, %s126_s1, [#allocation4]  }
  0x23   :  { %87 = dma.done.wait [#allocation4], 128  }
  0x24   :  { %88 = vsyncadd [#allocation4], 4294967168 }
  0x25   :  { %37 = vsyncpa [#allocation3], 1 }
  0x26   :  { %38 = vsyncpa [#allocation4], 1 }

</bundles_post_ra>
